<compile_context>
chip_gen: v7x
topology: tpu7x:2x2x1
jax: 0.10.0
libtpu: 0.0.40
codegen_flags: <defaults>
</compile_context>

<pallas_src>
import functools

import jax
import jax.numpy as jnp
from jax.experimental import pallas as pl
from jax.experimental.pallas import tpu as pltpu


# ---------------------------------------------------------------------------
# One-time probe: which direction does pltpu.roll rotate on this build?
# ---------------------------------------------------------------------------

def _roll_probe_kernel(x_ref, o_ref):
    o_ref[...] = pltpu.roll(x_ref[...], 1, axis=1)


@functools.lru_cache(maxsize=None)
def _hw_roll_convention():
    """Returns 'jnp' (roll(x,s)[i]==x[i-s]), 'rev' (==x[i+s]), or None."""
    try:
        with jax.ensure_compile_time_eval():
            x = jnp.broadcast_to(jnp.arange(128, dtype=jnp.int32), (8, 128))
            out = pl.pallas_call(
                _roll_probe_kernel,
                out_shape=jax.ShapeDtypeStruct((8, 128), jnp.int32),
            )(x)
            v = int(out[0, 0])
    except Exception:  # conservative fallback: use jnp.roll inside the kernel
        return None
    if v == 127:
        return 'jnp'
    if v == 1:
        return 'rev'
    return None


def _shift_by(x, k, *, hw_conv):
    """Array whose lane c holds x[c + k] (wrapped).  k is a static int."""
    L = x.shape[-1]
    if hw_conv == 'jnp':
        return pltpu.roll(x, L - k, axis=1)
    if hw_conv == 'rev':
        return pltpu.roll(x, k, axis=1)
    # Fallback (also used when L % 128 != 0): lowers to slice+concat.
    return jnp.roll(x, -k, axis=1)


# ---------------------------------------------------------------------------
# Kernels: blocks are (m, L) = m whole images, one image per sublane row.
# ---------------------------------------------------------------------------

def _tv_kernel(x_ref, sdy_ref, sdx_ref, vmask_ref, hmask_ref, *,
               W, n_valid, hw_conv):
    i = pl.program_id(1)

    @pl.when(i == 0)
    def _init():
        L = x_ref.shape[-1]
        lane = jax.lax.broadcasted_iota(jnp.int32, (1, L), 1)
        vmask_ref[...] = (lane < (L - W)).astype(jnp.float32)          # row below exists
        hmask_ref[...] = ((lane % W) != (W - 1)).astype(jnp.float32)   # not last column
        sdy_ref[...] = jnp.zeros_like(sdy_ref)
        sdx_ref[...] = jnp.zeros_like(sdx_ref)

    step = pl.program_id(0) * pl.num_programs(1) + i

    @pl.when(step < n_valid)   # skip the dummy tail block (odd block counts)
    def _acc():
        x = x_ref[...].astype(jnp.float32)
        # TODO(synk): bf16 inputs could keep the diff/abs in bf16 on v6e/v7x.
        xv = _shift_by(x, W, hw_conv=hw_conv)   # x at flat offset +W (row below)
        xh = _shift_by(x, 1, hw_conv=hw_conv)   # x at flat offset +1 (right)
        ady = jnp.abs(x - xv) * vmask_ref[...]
        adx = jnp.abs(x - xh) * hmask_ref[...]
        sdy_ref[...] += jnp.sum(ady)
        sdx_ref[...] += jnp.sum(adx)


def _wtv_kernel(x_ref, w_ref, sdy_ref, sdx_ref, swy_ref, swx_ref,
                vmask_ref, hmask_ref, *, W, n_valid, hw_conv):
    i = pl.program_id(1)

    @pl.when(i == 0)
    def _init():
        L = x_ref.shape[-1]
        lane = jax.lax.broadcasted_iota(jnp.int32, (1, L), 1)
        vmask_ref[...] = (lane < (L - W)).astype(jnp.float32)
        hmask_ref[...] = ((lane % W) != (W - 1)).astype(jnp.float32)
        sdy_ref[...] = jnp.zeros_like(sdy_ref)
        sdx_ref[...] = jnp.zeros_like(sdx_ref)
        swy_ref[...] = jnp.zeros_like(swy_ref)
        swx_ref[...] = jnp.zeros_like(swx_ref)

    step = pl.program_id(0) * pl.num_programs(1) + i

    @pl.when(step < n_valid)
    def _acc():
        x = x_ref[...].astype(jnp.float32)
        w = w_ref[...].astype(jnp.float32)
        xv = _shift_by(x, W, hw_conv=hw_conv)
        xh = _shift_by(x, 1, hw_conv=hw_conv)
        # Masked weight slabs serve both the numerators and the denominators.
        wv = w * vmask_ref[...]
        wh = w * hmask_ref[...]
        sdy_ref[...] += jnp.sum(jnp.abs(x - xv) * wv)
        sdx_ref[...] += jnp.sum(jnp.abs(x - xh) * wh)
        swy_ref[...] += jnp.sum(wv)
        swx_ref[...] += jnp.sum(wh)


# ---------------------------------------------------------------------------
# Wrapper
# ---------------------------------------------------------------------------

def _plan_rows(R, L, target_bytes):
    """Choose rows-per-block m and (possibly padded) total rows R_pad."""
    bytes_per_row = L * 4
    if R * bytes_per_row <= target_bytes or R < 8:
        return R, R                                   # single block (full extent)
    fit = [m for m in range(8, R + 1, 8)
           if R % m == 0 and m * bytes_per_row <= target_bytes]
    if fit:
        return max(fit), R                            # aligned exact divisor
    # Awkward R: pick an aligned block size and zero-pad the rows up to a
    # multiple of it (zero rows add exactly 0 to every accumulated sum).
    m = max(8, min(target_bytes // bytes_per_row, R) // 8 * 8)
    return m, pl.cdiv(R, m) * m
    # TODO(synk): very large single images (one row >> target) would need an
    # additional split along L with halo handling; not implemented.


def weighted_tv_loss_pallas(pred, weight=None, *, loss_weight=1.0,
                            reduction='mean', block_rows=None,
                            target_block_bytes=4 << 20,
                            vmem_limit_bytes=None):
    """Pallas implementation of basicsr WeightedTVLoss.forward.

    pred: (N, C, H, W).  weight: optional (N, C, H, W) or (N, 1, H, W).
    """
    if reduction not in ('mean', 'sum'):
        raise ValueError(f'Unsupported reduction mode: {reduction}. '
                         'Supported ones are: mean | sum')
    assert pred.ndim == 4, 'pred must be (N, C, H, W)'
    N, C, H, W = pred.shape
    if H < 2 or W < 2:
        raise ValueError('WeightedTVLoss requires H >= 2 and W >= 2.')

    L = H * W
    R = N * C
    x2 = pred.reshape(R, L)                 # free view; lane dim = whole image

    w2 = None
    if weight is not None:
        if weight.shape[1] == 1 and C > 1:
            # TODO(synk): keep the 1-channel weight un-broadcast in HBM (block
            # it per batch and expand in VMEM) to avoid this Cx HBM pass.
            weight = jnp.broadcast_to(weight, pred.shape)
        w2 = weight.reshape(R, L)

    if block_rows is not None:
        m = int(block_rows)
        assert m % 8 == 0 or m == R, (R, m)
        R_pad = pl.cdiv(R, m) * m
    else:
        m, R_pad = _plan_rows(R, L, target_block_bytes)

    if R_pad > R:
        padspec = ((0, R_pad - R), (0, 0))
        x2 = jnp.pad(x2, padspec)
        if w2 is not None:
            w2 = jnp.pad(w2, padspec)

    G = R_pad // m                           # number of real row-blocks
    P = 2 if G >= 2 else 1                   # split reduction across 2 TCs (v7x)
    Gi = pl.cdiv(G, P)                       # steps per core (last may be dummy)

    hw_conv = _hw_roll_convention() if (L % 128 == 0) else None

    in_spec = pl.BlockSpec(
        (m, L), lambda p, i: (jnp.minimum(p * Gi + i, G - 1), 0))
    acc_spec = pl.BlockSpec((None, 1, 1), lambda p, i: (p, 0, 0))
    acc_shape = jax.ShapeDtypeStruct((P, 1, 1), jnp.float32)
    mask_scratch = [pltpu.VMEM((1, L), jnp.float32),
                    pltpu.VMEM((1, L), jnp.float32)]

    n_inputs = 1 if w2 is None else 2
    if vmem_limit_bytes is None:
        need = n_inputs * 2 * m * L * 4 + 2 * L * 4 + (8 << 20)
        vmem_limit_bytes = min(max(need, 32 << 20), 100 << 20)

    cparams = pltpu.CompilerParams(
        dimension_semantics=("parallel", "arbitrary"),
        vmem_limit_bytes=int(vmem_limit_bytes))

    if w2 is None:
        sdy, sdx = pl.pallas_call(
            functools.partial(_tv_kernel, W=W, n_valid=G, hw_conv=hw_conv),
            grid=(P, Gi),
            in_specs=[in_spec],
            out_specs=(acc_spec, acc_spec),
            out_shape=(acc_shape, acc_shape),
            scratch_shapes=mask_scratch,
            compiler_params=cparams,
        )(x2)
        sum_dy = jnp.sum(sdy)
        sum_dx = jnp.sum(sdx)
        if reduction == 'mean':
            y_term = sum_dy / jnp.float32(N * C * (H - 1) * W)
            x_term = sum_dx / jnp.float32(N * C * H * (W - 1))
        else:  # 'sum'
            y_term, x_term = sum_dy, sum_dx
    else:
        sdy, sdx, swy, swx = pl.pallas_call(
            functools.partial(_wtv_kernel, W=W, n_valid=G, hw_conv=hw_conv),
            grid=(P, Gi),
            in_specs=[in_spec, in_spec],
            out_specs=(acc_spec, acc_spec, acc_spec, acc_spec),
            out_shape=(acc_shape, acc_shape, acc_shape, acc_shape),
            scratch_shapes=mask_scratch,
            compiler_params=cparams,
        )(x2, w2)
        sum_dy = jnp.sum(sdy)
        sum_dx = jnp.sum(sdx)
        if reduction == 'mean':
            # basicsr: sum(|d| * w) / sum(w_sliced); the broadcast above makes
            # the 1-channel case's "* C" denominator factor exact.
            y_term = sum_dy / jnp.sum(swy)
            x_term = sum_dx / jnp.sum(swx)
        else:  # 'sum'
            y_term, x_term = sum_dy, sum_dx

    return (loss_weight * (y_term + x_term)).astype(pred.dtype)


# ---------------------------------------------------------------------------
# Demo / check
# ---------------------------------------------------------------------------

if __name__ == "__main__":
    key = jax.random.PRNGKey(0)
    k1, k2, k3, k4, k5 = jax.random.split(key, 5)

    def ref_tv(pred, weight=None, loss_weight=1.0, reduction='mean'):
        """Pure-JAX reference with basicsr WeightedTVLoss semantics."""
        def l1(p, t, w):
            d = jnp.abs(p - t)
            if w is None:
                return jnp.mean(d) if reduction == 'mean' else jnp.sum(d)
            wb = jnp.broadcast_to(w, d.shape)
            num = jnp.sum(d * wb)
            if reduction == 'sum':
                return num
            denom = jnp.sum(w) * (d.shape[1] if w.shape[1] == 1 else 1)
            return num / denom
        yw = None if weight is None else weight[:, :, :-1, :]
        xw = None if weight is None else weight[:, :, :, :-1]
        y = loss_weight * l1(pred[:, :, :-1, :], pred[:, :, 1:, :], yw)
        x = loss_weight * l1(pred[:, :, :, :-1], pred[:, :, :, 1:], xw)
        return x + y

    checks = []

    # Case 1: default module config, unweighted, mean + sum.
    p1 = jax.random.normal(k1, (2, 4, 16, 16), dtype=jnp.float32)
    checks.append((weighted_tv_loss_pallas(p1, reduction='mean'),
                   ref_tv(p1, reduction='mean')))
    checks.append((weighted_tv_loss_pallas(p1, reduction='sum'),
                   ref_tv(p1, reduction='sum')))

    # Case 2: 1-channel weight, weighted mean, loss_weight != 1.
    p2 = jax.random.normal(k2, (2, 3, 32, 64), dtype=jnp.float32)
    w2 = jax.random.uniform(k3, (2, 1, 32, 64), dtype=jnp.float32) + 0.1
    checks.append((weighted_tv_loss_pallas(p2, w2, loss_weight=0.5,
                                           reduction='mean'),
                   ref_tv(p2, w2, loss_weight=0.5, reduction='mean')))

    # Case 3: full weight, multi-block grid + 2-way parallel split (even G).
    p3 = jax.random.normal(k4, (8, 4, 16, 16), dtype=jnp.float32)
    w3 = jax.random.uniform(k5, (8, 4, 16, 16), dtype=jnp.float32) + 0.1
    checks.append((weighted_tv_loss_pallas(p3, w3, reduction='mean',
                                           block_rows=8),
                   ref_tv(p3, w3, reduction='mean')))
    checks.append((weighted_tv_loss_pallas(p3, w3, reduction='sum',
                                           block_rows=8),
                   ref_tv(p3, w3, reduction='sum')))

    # Case 4: odd number of blocks -> exercises the guarded dummy tail step.
    p4 = p3[:6]
    checks.append((weighted_tv_loss_pallas(p4, reduction='mean', block_rows=8),
                   ref_tv(p4, reduction='mean')))

    jax.block_until_ready([c[0] for c in checks])

    for got, want in checks:
        assert jnp.allclose(got, want, rtol=1e-4, atol=1e-4), (got, want)

    print("KERNEL_OK")
</pallas_src>

<mosaic_0001>
module attributes {stable_mosaic.version = 11 : i64} {
  func.func @_roll_probe_kernel(%arg0: memref<8x128xi32, #tpu.memory_space<vmem>>, %arg1: memref<8x128xi32, #tpu.memory_space<vmem>>) attributes {dimension_semantics = [], scalar_prefetch = 0 : i64, scratch_operands = 0 : i64, tpu.core_type = #tpu.core_type<tc>} {
    %c0 = arith.constant 0 : index
    %c0_0 = arith.constant 0 : index
    %0 = vector.load %arg0[%c0, %c0_0] : memref<8x128xi32, #tpu.memory_space<vmem>>, vector<8x128xi32>
    %c1_i32 = arith.constant 1 : i32
    %1 = tpu.dynamic_rotate %0 by %c1_i32 dim 1 : vector<8x128xi32>, i32 -> vector<8x128xi32>
    %c0_1 = arith.constant 0 : index
    %c0_2 = arith.constant 0 : index
    %2 = vector.load %arg1[%c0_1, %c0_2] : memref<8x128xi32, #tpu.memory_space<vmem>>, vector<8x128xi32>
    tpu.vector_store %arg1[%c0_1, %c0_2], %1 {strides = array<i32>} : memref<8x128xi32, #tpu.memory_space<vmem>>, vector<8x128xi32>,
    return
  }
}

module attributes {stable_mosaic.version = 11 : i64} {
  func.func @_tv_kernel(%arg0: i32, %arg1: i32, %arg2: memref<8x256xf32, #tpu.memory_space<vmem>>, %arg3: memref<1x1x1xf32, #tpu.memory_space<vmem>>, %arg4: memref<1x1x1xf32, #tpu.memory_space<vmem>>, %arg5: memref<1x256xf32, #tpu.memory_space<vmem>>, %arg6: memref<1x256xf32, #tpu.memory_space<vmem>>) attributes {dimension_semantics = [#tpu.dimension_semantics<parallel>, #tpu.dimension_semantics<arbitrary>], iteration_bounds = array<i64: 1, 1>, scalar_prefetch = 0 : i64, scratch_operands = 2 : i64, tpu.core_type = #tpu.core_type<tc>, window_params = [{transform_indices = @transform_0, window_bounds = array<i64: 8, 256>}, {transform_indices = @transform_1, window_bounds = array<i64: 1, 1, 1>}, {transform_indices = @transform_2, window_bounds = array<i64: 1, 1, 1>}]} {
    %c0_i32 = arith.constant 0 : i32
    %0 = arith.cmpi eq, %arg1, %c0_i32 : i32
    %1 = arith.extui %0 : i1 to i32
    %c0_i32_0 = arith.constant 0 : i32
    %2 = arith.cmpi ne, %1, %c0_i32_0 : i32
    scf.if %2 {
      %8 = tpu.iota {dimensions = array<i32: 1>} : vector<1x256xi32>
      %c240_i32 = arith.constant 240 : i32
      %9 = vector.broadcast %c240_i32 : i32 to vector<1x256xi32>
      %10 = arith.cmpi slt, %8, %9 : vector<1x256xi32>
      %11 = arith.extui %10 : vector<1x256xi1> to vector<1x256xi32>
      %12 = arith.sitofp %11 : vector<1x256xi32> to vector<1x256xf32>
      %c0 = arith.constant 0 : index
      %c0_3 = arith.constant 0 : index
      %13 = vector.load %arg5[%c0, %c0_3] : memref<1x256xf32, #tpu.memory_space<vmem>>, vector<1x256xf32>
      tpu.vector_store %arg5[%c0, %c0_3], %12 {strides = array<i32>} : memref<1x256xf32, #tpu.memory_space<vmem>>, vector<1x256xf32>,
      %c16_i32 = arith.constant 16 : i32
      %c0_i32_4 = arith.constant 0 : i32
      %14 = arith.cmpi eq, %c16_i32, %c0_i32_4 : i32
      %c1_i32_5 = arith.constant 1 : i32
      %15 = arith.select %14, %c1_i32_5, %c16_i32 : i32
      %16 = vector.broadcast %15 : i32 to vector<1x256xi32>
      %17 = arith.remsi %8, %16 : vector<1x256xi32>
      %c0_i32_6 = arith.constant 0 : i32
      %18 = vector.broadcast %c0_i32_6 : i32 to vector<1x256xi32>
      %19 = arith.cmpi ne, %17, %18 : vector<1x256xi32>
      %c0_i32_7 = arith.constant 0 : i32
      %20 = vector.broadcast %c0_i32_7 : i32 to vector<1x256xi32>
      %21 = arith.cmpi slt, %17, %20 : vector<1x256xi32>
      %c0_i32_8 = arith.constant 0 : i32
      %22 = arith.cmpi slt, %15, %c0_i32_8 : i32
      %23 = vector.broadcast %22 : i1 to vector<1x256xi1>
      %24 = vector.broadcast %23 : vector<1x256xi1> to vector<1x256xi1>
      %25 = arith.xori %21, %24 : vector<1x256xi1>
      %26 = arith.andi %25, %19 : vector<1x256xi1>
      %27 = vector.broadcast %15 : i32 to vector<1x256xi32>
      %28 = arith.addi %17, %27 : vector<1x256xi32>
      %29 = arith.select %26, %28, %17 : vector<1x256xi1>, vector<1x256xi32>
      %c15_i32 = arith.constant 15 : i32
      %30 = vector.broadcast %c15_i32 : i32 to vector<1x256xi32>
      %31 = arith.cmpi ne, %29, %30 : vector<1x256xi32>
      %32 = arith.extui %31 : vector<1x256xi1> to vector<1x256xi32>
      %33 = arith.sitofp %32 : vector<1x256xi32> to vector<1x256xf32>
      %c0_9 = arith.constant 0 : index
      %c0_10 = arith.constant 0 : index
      %34 = vector.load %arg6[%c0_9, %c0_10] : memref<1x256xf32, #tpu.memory_space<vmem>>, vector<1x256xf32>
      tpu.vector_store %arg6[%c0_9, %c0_10], %33 {strides = array<i32>} : memref<1x256xf32, #tpu.memory_space<vmem>>, vector<1x256xf32>,
      %cst = arith.constant 0.000000e+00 : f32
      %35 = vector.broadcast %cst : f32 to vector<1x1xf32>
      %c0_11 = arith.constant 0 : index
      %c0_12 = arith.constant 0 : index
      %c0_13 = arith.constant 0 : index
      %36 = vector.load %arg3[%c0_11, %c0_12, %c0_13] : memref<1x1x1xf32, #tpu.memory_space<vmem>>, vector<1x1x1xf32>
      %37 = vector.shape_cast %36 : vector<1x1x1xf32> to vector<1x1xf32>
      %38 = vector.shape_cast %35 : vector<1x1xf32> to vector<1x1x1xf32>
      tpu.vector_store %arg3[%c0_11, %c0_12, %c0_13], %38 {strides = array<i32>} : memref<1x1x1xf32, #tpu.memory_space<vmem>>, vector<1x1x1xf32>,
      %cst_14 = arith.constant 0.000000e+00 : f32
      %39 = vector.broadcast %cst_14 : f32 to vector<1x1xf32>
      %c0_15 = arith.constant 0 : index
      %c0_16 = arith.constant 0 : index
      %c0_17 = arith.constant 0 : index
      %40 = vector.load %arg4[%c0_15, %c0_16, %c0_17] : memref<1x1x1xf32, #tpu.memory_space<vmem>>, vector<1x1x1xf32>
      %41 = vector.shape_cast %40 : vector<1x1x1xf32> to vector<1x1xf32>
      %42 = vector.shape_cast %39 : vector<1x1xf32> to vector<1x1x1xf32>
      tpu.vector_store %arg4[%c0_15, %c0_16, %c0_17], %42 {strides = array<i32>} : memref<1x1x1xf32, #tpu.memory_space<vmem>>, vector<1x1x1xf32>,
    } else {
    }
    %c1_i32 = arith.constant 1 : i32
    %3 = arith.muli %arg0, %c1_i32 : i32
    %4 = arith.addi %3, %arg1 : i32
    %c1_i32_1 = arith.constant 1 : i32
    %5 = arith.cmpi slt, %4, %c1_i32_1 : i32
    %6 = arith.extui %5 : i1 to i32
    %c0_i32_2 = arith.constant 0 : i32
    %7 = arith.cmpi ne, %6, %c0_i32_2 : i32
    scf.if %7 {
      %c0 = arith.constant 0 : index
      %c0_3 = arith.constant 0 : index
      %8 = vector.load %arg2[%c0, %c0_3] : memref<8x256xf32, #tpu.memory_space<vmem>>, vector<8x256xf32>
      %9 = vector.extract_strided_slice %8 {offsets = [0, 16], sizes = [8, 240], strides = [1, 1]} : vector<8x256xf32> to vector<8x240xf32>
      %10 = vector.extract_strided_slice %8 {offsets = [0, 0], sizes = [8, 16], strides = [1, 1]} : vector<8x256xf32> to vector<8x16xf32>
      %11 = tpu.concatenate %9, %10 in 1 : vector<8x240xf32>, vector<8x16xf32> -> vector<8x256xf32>
      %12 = vector.extract_strided_slice %8 {offsets = [0, 1], sizes = [8, 255], strides = [1, 1]} : vector<8x256xf32> to vector<8x255xf32>
      %13 = vector.extract_strided_slice %8 {offsets = [0, 0], sizes = [8, 1], strides = [1, 1]} : vector<8x256xf32> to vector<8x1xf32>
      %14 = tpu.concatenate %12, %13 in 1 : vector<8x255xf32>, vector<8x1xf32> -> vector<8x256xf32>
      %15 = arith.subf %8, %11 : vector<8x256xf32>
      %16 = math.absf %15 : vector<8x256xf32>
      %c0_4 = arith.constant 0 : index
      %c0_5 = arith.constant 0 : index
      %17 = vector.load %arg5[%c0_4, %c0_5] : memref<1x256xf32, #tpu.memory_space<vmem>>, vector<1x256xf32>
      %18 = vector.broadcast %17 : vector<1x256xf32> to vector<8x256xf32>
      %19 = arith.mulf %16, %18 : vector<8x256xf32>
      %20 = arith.subf %8, %14 : vector<8x256xf32>
      %21 = math.absf %20 : vector<8x256xf32>
      %c0_6 = arith.constant 0 : index
      %c0_7 = arith.constant 0 : index
      %22 = vector.load %arg6[%c0_6, %c0_7] : memref<1x256xf32, #tpu.memory_space<vmem>>, vector<1x256xf32>
      %23 = vector.broadcast %22 : vector<1x256xf32> to vector<8x256xf32>
      %24 = arith.mulf %21, %23 : vector<8x256xf32>
      %c0_8 = arith.constant 0 : index
      %c0_9 = arith.constant 0 : index
      %c0_10 = arith.constant 0 : index
      %25 = vector.load %arg3[%c0_8, %c0_9, %c0_10] : memref<1x1x1xf32, #tpu.memory_space<vmem>>, vector<1x1x1xf32>
      %26 = vector.shape_cast %25 : vector<1x1x1xf32> to vector<1x1xf32>
      %27 = vector.shape_cast %19 : vector<8x256xf32> to vector<1x8x256xf32>
      %cst = arith.constant dense<0.000000e+00> : vector<1xf32>
      %28 = vector.multi_reduction <add>, %27, %cst [1, 2] : vector<1x8x256xf32> to vector<1xf32>
      %29 = vector.shape_cast %28 : vector<1xf32> to vector<1x1x1xf32>
      %30 = vector.extract %29[0, 0, 0] : f32 from vector<1x1x1xf32>
      %31 = vector.broadcast %30 : f32 to vector<1x1xf32>
      %32 = arith.addf %26, %31 : vector<1x1xf32>
      %c0_11 = arith.constant 0 : index
      %c0_12 = arith.constant 0 : index
      %c0_13 = arith.constant 0 : index
      %33 = vector.load %arg3[%c0_11, %c0_12, %c0_13] : memref<1x1x1xf32, #tpu.memory_space<vmem>>, vector<1x1x1xf32>
      %34 = vector.shape_cast %33 : vector<1x1x1xf32> to vector<1x1xf32>
      %35 = vector.shape_cast %32 : vector<1x1xf32> to vector<1x1x1xf32>
      tpu.vector_store %arg3[%c0_11, %c0_12, %c0_13], %35 {strides = array<i32>} : memref<1x1x1xf32, #tpu.memory_space<vmem>>, vector<1x1x1xf32>,
      %c0_14 = arith.constant 0 : index
      %c0_15 = arith.constant 0 : index
      %c0_16 = arith.constant 0 : index
      %36 = vector.load %arg4[%c0_14, %c0_15, %c0_16] : memref<1x1x1xf32, #tpu.memory_space<vmem>>, vector<1x1x1xf32>
      %37 = vector.shape_cast %36 : vector<1x1x1xf32> to vector<1x1xf32>
      %38 = vector.shape_cast %24 : vector<8x256xf32> to vector<1x8x256xf32>
      %cst_17 = arith.constant dense<0.000000e+00> : vector<1xf32>
      %39 = vector.multi_reduction <add>, %38, %cst_17 [1, 2] : vector<1x8x256xf32> to vector<1xf32>
      %40 = vector.shape_cast %39 : vector<1xf32> to vector<1x1x1xf32>
      %41 = vector.extract %40[0, 0, 0] : f32 from vector<1x1x1xf32>
      %42 = vector.broadcast %41 : f32 to vector<1x1xf32>
      %43 = arith.addf %37, %42 : vector<1x1xf32>
      %c0_18 = arith.constant 0 : index
      %c0_19 = arith.constant 0 : index
      %c0_20 = arith.constant 0 : index
      %44 = vector.load %arg4[%c0_18, %c0_19, %c0_20] : memref<1x1x1xf32, #tpu.memory_space<vmem>>, vector<1x1x1xf32>
      %45 = vector.shape_cast %44 : vector<1x1x1xf32> to vector<1x1xf32>
      %46 = vector.shape_cast %43 : vector<1x1xf32> to vector<1x1x1xf32>
      tpu.vector_store %arg4[%c0_18, %c0_19, %c0_20], %46 {strides = array<i32>} : memref<1x1x1xf32, #tpu.memory_space<vmem>>, vector<1x1x1xf32>,
    } else {
    }
    return
  }
  func.func @transform_0(%arg0: i32, %arg1: i32) -> (i32, i32) {
    %c1_i32 = arith.constant 1 : i32
    %0 = arith.muli %arg0, %c1_i32 : i32
    %1 = arith.addi %0, %arg1 : i32
    %c0_i32 = arith.constant 0 : i32
    %2 = arith.minsi %1, %c0_i32 : i32
    %c0_i32_0 = arith.constant 0 : i32
    %c0_i32_1 = arith.constant 0 : i32
    return %2, %c0_i32_0 : i32, i32
  }
  func.func @transform_1(%arg0: i32, %arg1: i32) -> (i32, i32, i32) {
    %c0_i32 = arith.constant 0 : i32
    %c0_i32_0 = arith.constant 0 : i32
    %c0_i32_1 = arith.constant 0 : i32
    return %arg0, %c0_i32, %c0_i32_0 : i32, i32, i32
  }
  func.func @transform_2(%arg0: i32, %arg1: i32) -> (i32, i32, i32) {
    %c0_i32 = arith.constant 0 : i32
    %c0_i32_0 = arith.constant 0 : i32
    %c0_i32_1 = arith.constant 0 : i32
    return %arg0, %c0_i32, %c0_i32_0 : i32, i32, i32
  }
}

</mosaic_0001>

<bundles_post_ra>
// kernel: tpu_custom_call.1
= control target key start
LH: loop header
LB: loop body
LE: loop exit
PB: predicated region body
PF: predicated region fallthrough
CT: control target
= control target key end

     0   :  { %6 = vsyncpa [#allocation3], 0  ;;  %s128_s0 = inlined_call_operand.hbm [shape: s32[8,128], index: 0, kind: input, shape index: {}]   ;;  %s129_s1 = inlined_call_operand.hbm [shape: s32[8,128], index: 1, kind: output, shape index: {}]  }
   0x1   :  { %7 = vsyncpa [#allocation4], 0  ;;  %s91_s6 = smov [#allocation2]   ;;  %s43_s10 = scalar_lea.hbm %s128_s0, 128 }
   0x2   :  { %s14_s7 = sshll.u32 %s91_s6, 4  ;;  %p44_p0 = scmp.ne.s32.totalorder %s128_s0, %s43_s10  ;;  %s15_s7 = int_to_ptr.vmem [resolvable:$true] %s14_s7 }
   0x3   :  { %p47_p1 = scmp.lt.u32.totalorder %s43_s10, %s128_s0 }
   0x5   :  { %p49_p2 = pnand %p47_p1, %p44_p0 }
   0x7   :  { %52 = shalt.err (!%p49_p2)
}
   0x8   :  { %s53_s15 = scalar_lea.vmem %s15_s7, 128  ;;  %p58_p4 = scmp.lt.s32.totalorder %s15_s7, %s15_s7 }
   0x9   :  { %p54_p3 = scmp.ne.s32.totalorder %s15_s7, %s53_s15  ;;  %p59_p5 = scmp.lt.s32.totalorder %s53_s15, %s53_s15 }
   0xb   :  { %p60_p6 = por %p59_p5, %p58_p4 }
   0xd   :  { %p61_p7 = pnand %p60_p6, %p54_p3 }
   0xf   :  { %64 = shalt.err (!%p61_p7)
}
  0x10   :  { %17 = dma.hbm_to_vmem [thread:$0]  %s128_s0, 128, %s15_s7, [#allocation3]  }
  0x11   :  { %87 = dma.done.wait [#allocation3], 128  }
  0x12   :  { %88 = vsyncadd [#allocation3], 4294967168  ;;  %v21_v0 = vld [vmem:[#allocation2] sm:$0xff]  ;;  %s92_s18 = smov 1   ;;  %s93_s19 = smov [#allocation5]  }
  0x13   :  { %22 = vrot.lane.b32.xlu0 %v21_v0, %s92_s18  ;;  %s31_s20 = sshll.u32 %s93_s19, 4  ;;  %s32_s20 = int_to_ptr.vmem [resolvable:$true] %s31_s20 }
  0x14   :  { %s65_s21 = scalar_lea.vmem %s32_s20, 128  ;;  %p70_p9 = scmp.lt.s32.totalorder %s32_s20, %s32_s20 }
  0x15   :  { %p66_p8 = scmp.ne.s32.totalorder %s32_s20, %s65_s21  ;;  %p71_p10 = scmp.lt.s32.totalorder %s65_s21, %s65_s21 }
  0x17   :  { %p72_p11 = por %p71_p10, %p70_p9 }
  0x19   :  { %p73_p12 = pnand %p72_p11, %p66_p8 }
  0x85   :  { %v23_v1 = vpop.permute.xlu0 %22 }
  0x86   :  { %24 = vst [vmem:[#allocation5] sm:$0xff] %v23_v1 }
  0x87   :  { %76 = shalt.err (!%p73_p12)
}
  0x88   :  { %s77_s0 = scalar_lea.hbm %s129_s1, 128 }
  0x89   :  { %p78_p13 = scmp.ne.s32.totalorder %s129_s1, %s77_s0  ;;  %p81_p0 = scmp.lt.u32.totalorder %s77_s0, %s129_s1 }
  0x8b   :  { %p83_p1 = pnand %p81_p0, %p78_p13 }
  0x8d   :  { %86 = shalt.err (!%p83_p1)
}
  0x8e   :  { %34 = dma.vmem_to_hbm [thread:$0]  %s32_s20, 128, %s129_s1, [#allocation4]  }
  0x8f   :  { %89 = dma.done.wait [#allocation4], 128  }
  0x90   :  { %90 = vsyncadd [#allocation4], 4294967168 }
  0x91   :  { %38 = vsyncpa [#allocation3], 1 }
  0x92   :  { %39 = vsyncpa [#allocation4], 1 }

// kernel: tpu_custom_call.1
= control target key start
LH: loop header
LB: loop body
LE: loop exit
PB: predicated region body
PF: predicated region fallthrough
CT: control target
= control target key end

     0   :  { %8 = vsyncpa [#allocation5], 0  ;;  %s404_s0 = inlined_call_operand.hbm [shape: f32[8,256], index: 0, kind: input, shape index: {}]   ;;  %s405_s1 = inlined_call_operand.hbm [shape: f32[1,1,1], index: 1, kind: output, shape index: {0}]   ;;  %s406_s2 = inlined_call_operand.hbm [shape: f32[1,1,1], index: 2, kind: output, shape index: {1}]  }
   0x1   :  { %9 = vsyncpa [#allocation6], 0 }
   0x2   :  { %10 = vsyncpa [#allocation9], 0  ;;  %s333_s9 = smov [#allocation4]   ;;  %s261_s13 = scalar_lea.hbm %s404_s0, 256 }
   0x3   :  { %s23_s10 = sshll.u32 %s333_s9, 4  ;;  %p262_p0 = scmp.ne.s32.totalorder %s404_s0, %s261_s13  ;;  %s24_s10 = int_to_ptr.vmem [resolvable:$true] %s23_s10 }
   0x4   :  { %p265_p1 = scmp.lt.u32.totalorder %s261_s13, %s404_s0 }
   0x6   :  { %p267_p2 = pnand %p265_p1, %p262_p0 }
   0x8   :  { %270 = shalt.err (!%p267_p2)
}
   0x9   :  { %s271_s18 = scalar_lea.vmem %s24_s10, 256  ;;  %p276_p4 = scmp.lt.s32.totalorder %s24_s10, %s24_s10 }
   0xa   :  { %p272_p3 = scmp.ne.s32.totalorder %s24_s10, %s271_s18  ;;  %p277_p5 = scmp.lt.s32.totalorder %s271_s18, %s271_s18 }
   0xc   :  { %p278_p6 = por %p277_p5, %p276_p4 }
   0xe   :  { %p279_p7 = pnand %p278_p6, %p272_p3 }
  0x10   :  { %282 = shalt.err (!%p279_p7)
}
  0x11   :  { %26 = dma.hbm_to_vmem [thread:$0]  %s404_s0, 256, %s24_s10, [#allocation5]  }
  0x12   :  { %327 = dma.done.wait [#allocation5], 256  }
  0x13   :  { %328 = vsyncadd [#allocation5], 4294967040  ;;  %v37_v0 = vlaneseq  ;;  %v334_v2 = vmov 1966171168   ;;  %v126_v10 = vld [vmem:[#allocation4] sm:$0xff]  ;;  %v335_v11 = vmov 0.0  }
  0x14   :  { %v50_v3 = vunpack.c.l.s4 %v334_v2  ;;  %s336_s21 = smov 127   ;;  %s337_s0 = smov 112   ;;  %v338_v14 = vmov 1.0   ;;  %v127_v16 = vld [vmem:[#allocation4 + $0x8] sm:$0xff]  ;;  %vm144_vm4 = vcmask 1039360   ;;  %vm134_vm5 = vcmask 916480  }
  0x15   :  { %v38_v1 = vand.u32 127, %v37_v0  ;;  %v53_v4 = vshrl.u32 %v37_v0, 7  ;;  %140 = vrot.lane.b32.xlu1 %v126_v10, %s336_s21  ;;  %130 = vrot.lane.b32.xlu0 %v126_v10, %s337_s0  ;;  %vm66_vm3 = vcmp.lt.s32.totalorder %v37_v0, 256  ;;  %vm118_vm6 = vcmask 0   ;;  %s339_s22 = smov [#allocation7]   ;;  %s340_s25 = smov [#allocation8]  }
  0x16   :  { %v51_v6 = vunpack.c.0.s8 %v50_v3  ;;  %119 = vst.msk [vmem:[#allocation7] sm:$0x1] %vm118_vm6, %v335_v11  ;;  %120 = vst.msk [vmem:[#allocation8] sm:$0x1] %vm118_vm6, %v335_v11  ;;  %s221_s23 = sshll.u32 %s339_s22, 4  ;;  %s231_s26 = sshll.u32 %s340_s25, 4  ;;  %s222_s23 = int_to_ptr.vmem [resolvable:$true] %s221_s23  ;;  %s370_s26 = int_to_ptr.vmem [resolvable:$true] %s231_s26 }
  0x17   :  { %v39_v5 = vadd.s32 128, %v38_v1  ;;  %v73_v7 = vand.u32 15, %v38_v1  ;;  %v158_v25 = vsub.s32 0, %v53_v4  ;;  %v162_v26 = vsub.s32 1, %v53_v4  ;;  %s283_s28 = scalar_lea.vmem %s222_s23, 16  ;;  %s287_s29 = scalar_lea.vmem %s222_s23, 32 }
  0x18   :  { %v54_v8 = vsub.s32 %v51_v6, %v53_v4  ;;  %p284_p8 = scmp.ne.s32.totalorder %s222_s23, %s283_s28  ;;  %p288_p9 = scmp.lt.s32.totalorder %s222_s23, %s222_s23 }
  0x19   :  { %vm41_vm0 = vcmp.lt.s32.totalorder %v39_v5, 240  ;;  %v80_v9 = vand.u32 15, %v39_v5  ;;  %vm93_vm1 = vcmp.ne.s32.totalorder %v73_v7, 15  ;;  %142 = vrot.lane.b32.xlu1 %v127_v16, %s336_s21  ;;  %132 = vrot.lane.b32.xlu0 %v127_v16, %s337_s0  ;;  %p289_p10 = scmp.lt.s32.totalorder %s287_s29, %s283_s28 }
  0x1a   :  { %v246_v12 = vsel %vm41_vm0, 1.0, %v335_v11  ;;  %v247_v13 = vsel %vm93_vm1, 1.0, %v335_v11 }
  0x1b   :  { %v48_v15 = vcombine.low %v338_v14, %v246_v12  ;;  %vm94_vm2 = vcmp.ne.s32.totalorder %v80_v9, 15  ;;  %p290_p11 = por %p289_p10, %p288_p9 }
  0x1c   :  { %v248_v17 = vsel %vm94_vm2, 1.0, %v335_v11 }
  0x1d   :  { %v55_v18 = vrot.slane %v48_v15, %v54_v8  ;;  %v101_v19 = vcombine.low %v247_v13, %v248_v17  ;;  %v186_v3 = vld [vmem:[#allocation7] sm:$0x1]  ;;  %v201_v4 = vld [vmem:[#allocation8] sm:$0x1]  ;;  %p291_p12 = pnand %p290_p11, %p284_p8 }
  0x1f   :  { %v62_v20 = vrot.slane %v55_v18, %v54_v8  ;;  %v108_v21 = vrot.slane %v101_v19, %v54_v8 }
  0x21   :  { %v115_v22 = vrot.slane %v108_v21, %v54_v8  ;;  %68 = vst.msk [vmem:[#allocation2] sm:$0x3] %vm66_vm3, %v62_v20 }
  0x23   :  { %117 = vst.msk [vmem:[#allocation3] sm:$0x3] %vm66_vm3, %v115_v22 }
  0x28   :  { %v154_v28 = vld [vmem:[#allocation2] sm:$0x3] }
  0x29   :  { %v159_v33 = vrot.slane %v154_v28, %v158_v25  ;;  %v163_v42 = vrot.slane %v154_v28, %v162_v26 }
  0x2a   :  { %v172_v27 = vld [vmem:[#allocation3] sm:$0x3] }
  0x2b   :  { %v177_v31 = vrot.slane %v172_v27, %v158_v25  ;;  %v181_v32 = vrot.slane %v172_v27, %v162_v26 }
  0x87   :  { %v141_v23 = vpop.permute.xlu1 %140  ;;  %v131_v24 = vpop.permute.xlu0 %130 }
  0x8b   :  { %v143_v29 = vpop.permute.xlu1 %142  ;;  %v133_v30 = vpop.permute.xlu0 %132 }
  0x8c   :  { %v145_v34 = vsel %vm144_vm4, %v141_v23, %v143_v29  ;;  %v149_v35 = vsel %vm144_vm4, %v143_v29, %v141_v23  ;;  %v135_v36 = vsel %vm134_vm5, %v131_v24, %v133_v30  ;;  %v139_v37 = vsel %vm134_vm5, %v133_v30, %v131_v24 }
  0x8d   :  { %v168_v38 = vsub.f32 %v126_v10, %v145_v34  ;;  %v169_v39 = vsub.f32 %v127_v16, %v149_v35  ;;  %v150_v40 = vsub.f32 %v126_v10, %v135_v36  ;;  %v151_v41 = vsub.f32 %v127_v16, %v139_v37 }
  0x8f   :  { %v170_v43 = vand.u32 2147483647, %v168_v38  ;;  %v171_v44 = vand.u32 2147483647, %v169_v39  ;;  %v152_v45 = vand.u32 2147483647, %v150_v40 }
  0x90   :  { %v153_v46 = vand.u32 2147483647, %v151_v41 }
  0x91   :  { %v184_v47 = vmul.f32 %v177_v31, %v170_v43  ;;  %v185_v48 = vmul.f32 %v181_v32, %v171_v44  ;;  %v166_v49 = vmul.f32 %v159_v33, %v152_v45 }
  0x92   :  { %v167_v50 = vmul.f32 %v163_v42, %v153_v46 }
  0x93   :  { %v202_v51 = vadd.f32 %v185_v48, %v184_v47 }
  0x94   :  { %v187_v52 = vadd.f32 %v167_v50, %v166_v49 }
  0x95   :  { %203 = vadd.xlane.f32.xlu1 %v202_v51 }
  0x96   :  { %188 = vadd.xlane.f32.xlu0 %v187_v52 }
 0x122   :  { %v204_v53 = vpop.xlane.xlu1 %203 }
 0x123   :  { %v205_v54 = vrot.slane %v204_v53, 4  ;;  %v189_v55 = vpop.xlane.xlu0 %188 }
 0x124   :  { %v190_v56 = vrot.slane %v189_v55, 4 }
 0x125   :  { %v206_v57 = vadd.f32 %v205_v54, %v204_v53 }
 0x126   :  { %v191_v58 = vadd.f32 %v190_v56, %v189_v55 }
 0x127   :  { %v207_v59 = vrot.slane %v206_v57, 2 }
 0x128   :  { %v192_v60 = vrot.slane %v191_v58, 2 }
 0x129   :  { %v208_v61 = vadd.f32 %v207_v59, %v206_v57 }
 0x12a   :  { %v193_v62 = vadd.f32 %v192_v60, %v191_v58 }
 0x12b   :  { %v209_v63 = vrot.slane %v208_v61, 1 }
 0x12c   :  { %v194_v0 = vrot.slane %v193_v62, 1 }
 0x12d   :  { %v210_v1 = vadd.f32 %v209_v63, %v208_v61 }
 0x12e   :  { %v195_v2 = vadd.f32 %v194_v0, %v193_v62 }
 0x130   :  { %249 = vpush %v195_v2 }
 0x131   :  { %251 = vpush %v210_v1 }
 0x161   :  { %s250_s24 = spop %249 }
 0x162   :  { %v197_v5 = vstv %s250_s24  ;;  %s252_s27 = spop %251 }
 0x163   :  { %v198_v6 = vadd.f32 %v197_v5, %v186_v3  ;;  %v212_v7 = vstv %s252_s27 }
 0x164   :  { %v213_v8 = vadd.f32 %v212_v7, %v201_v4 }
 0x165   :  { %200 = vst.msk [vmem:[#allocation7] sm:$0x1] %vm118_vm6, %v198_v6 }
 0x166   :  { %214 = vst.msk [vmem:[#allocation8] sm:$0x1] %vm118_vm6, %v213_v8 }
 0x167   :  { %294 = shalt.err (!%p291_p12)
}
 0x168   :  { %s295_s4 = scalar_lea.hbm %s405_s1, 16 }
 0x169   :  { %p296_p13 = scmp.ne.s32.totalorder %s405_s1, %s295_s4  ;;  %p299_p0 = scmp.lt.u32.totalorder %s295_s4, %s405_s1 }
 0x16b   :  { %p301_p1 = pnand %p299_p0, %p296_p13 }
 0x16d   :  { %304 = shalt.err (!%p301_p1)
}
 0x16e   :  { %224 = dma.vmem_to_hbm [thread:$0]  %s222_s23, 16, %s405_s1, [#allocation6]  }
 0x16f   :  { %s305_s11 = scalar_lea.vmem %s370_s26, 16  ;;  %s309_s12 = scalar_lea.vmem %s370_s26, 32 }
 0x170   :  { %p306_p2 = scmp.ne.s32.totalorder %s370_s26, %s305_s11  ;;  %p310_p3 = scmp.lt.s32.totalorder %s370_s26, %s370_s26 }
 0x171   :  { %p311_p4 = scmp.lt.s32.totalorder %s309_s12, %s305_s11 }
 0x173   :  { %p312_p5 = por %p311_p4, %p310_p3 }
 0x175   :  { %p313_p6 = pnand %p312_p5, %p306_p2 }
 0x177   :  { %316 = shalt.err (!%p313_p6)
}
 0x178   :  { %s317_s15 = scalar_lea.hbm %s406_s2, 16 }
 0x179   :  { %p318_p7 = scmp.ne.s32.totalorder %s406_s2, %s317_s15  ;;  %p321_p8 = scmp.lt.u32.totalorder %s317_s15, %s406_s2 }
 0x17b   :  { %p323_p9 = pnand %p321_p8, %p318_p7 }
 0x17d   :  { %326 = shalt.err (!%p323_p9)
}
 0x17e   :  { %234 = dma.vmem_to_hbm [thread:$0]  %s370_s26, 16, %s406_s2, [#allocation9]  }
 0x17f   :  { %329 = dma.done.wait [#allocation6], 16  }
 0x180   :  { %330 = vsyncadd [#allocation6], 4294967280 }
 0x181   :  { %331 = dma.done.wait [#allocation9], 16  }
 0x182   :  { %332 = vsyncadd [#allocation9], 4294967280 }
 0x183   :  { %241 = vsyncpa [#allocation5], 1 }
 0x184   :  { %242 = vsyncpa [#allocation6], 1 }
 0x185   :  { %243 = vsyncpa [#allocation9], 1 }

</bundles_post_ra>
